<compile_context>
chip_gen: v6e
topology: v6e:2x2x1
jax: 0.10.0
libtpu: 0.0.40
codegen_flags: <defaults>
</compile_context>

<pallas_src>
import functools

import jax
import jax.numpy as jnp
from jax.experimental import pallas as pl
from jax.experimental.pallas import tpu as pltpu

NEG_SLOPE = 0.2      # PyG RGATConv default negative_slope
NEG_INF = -1e30
T_DST = 128          # dst-node tile (raise to 256 on v6e/v7x for big graphs)
T_SRC = 128          # src-node tile (block-sparsity / VMEM granularity)
T_NODE = 128         # node tile for the transform kernel


def _round_up(x, m):
    return ((x + m - 1) // m) * m


# ----------------------------------------------------------------------------
# Kernel 1: relation-fused transform + fused q/k attention projections
# ----------------------------------------------------------------------------
def _transform_kernel(x_ref, w_ref, h_ref, qi_ref, kj_ref, *, r_dim, cout,
                      kj_pad):
    # one lane-dense MXU matmul (bf16 operands, f32 accumulation) for all
    # relations and both attention projections at once
    big = jnp.dot(x_ref[...], w_ref[...], preferred_element_type=jnp.float32)
    hw = r_dim * cout
    for r in range(r_dim):
        # per-relation transformed features, stored bf16 (halves the resident
        # footprint downstream and removes the per-step cast in the hot loop)
        h_ref[r] = big[:, r * cout:(r + 1) * cout].astype(h_ref.dtype)
        # dst attention score column  qi_r = (X @ W_r) @ q = X @ (W_r q)
        qi_ref[r] = big[:, hw + r:hw + r + 1]
    # src attention scores in row layout: one [t_n, kj_pad] -> [kj_pad, t_n]
    # transpose per node tile, then lane-dense row stores
    kjt = jnp.transpose(big[:, hw + r_dim:hw + r_dim + kj_pad])
    for r in range(r_dim):
        kj_ref[r] = kjt[r:r + 1, :]


# ----------------------------------------------------------------------------
# Kernel 2: per dst-tile online softmax across (relation, src-tile) blocks
# ----------------------------------------------------------------------------
def _aggregate_kernel(nnz_ref, eff_r_ref, eff_d_ref, eff_s_ref,
                      h_ref, qi_ref, kj_ref, adj_ref, b_ref, o_ref,
                      m_sc, l_sc, acc_sc, *, apply_relu):
    d = pl.program_id(0)
    r = pl.program_id(1)
    s = pl.program_id(2)
    nr = pl.num_programs(1)
    ns = pl.num_programs(2)
    t_dst, cout = o_ref.shape
    t_src = adj_ref.shape[2]

    @pl.when(jnp.logical_and(r == 0, s == 0))
    def _init():
        m_sc[...] = jnp.full_like(m_sc, NEG_INF)
        l_sc[...] = jnp.zeros_like(l_sc)
        acc_sc[...] = jnp.zeros_like(acc_sc)

    step = (d * nr + r) * ns + s

    # Compute-level block sparsity (the adjacency DMA for empty blocks is
    # already skipped via the index_map -- see _adj_index_map below).
    @pl.when(nnz_ref[step] > 0)
    def _body():
        dst0 = pl.multiple_of(d * t_dst, t_dst)
        src0 = pl.multiple_of(s * t_src, t_src)
        h = h_ref[r, pl.ds(src0, t_src), :]               # [t_src, cout] bf16
        qi = qi_ref[r, pl.ds(dst0, t_dst), :]             # [t_dst, 1]    f32
        kj = kj_ref[r, :, pl.ds(src0, t_src)]             # [1, t_src]    f32
        adj = adj_ref[0].astype(jnp.float32)              # [t_dst, t_src]

        sc = qi + kj                                       # additive attention
        sc = jnp.where(sc >= 0, sc, NEG_SLOPE * sc)        # leaky_relu
        sc = jnp.where(adj > 0, sc, NEG_INF)

        # online (across relation & src blocks) softmax per destination row
        m_old = m_sc[...]
        m_new = jnp.maximum(m_old, jnp.max(sc, axis=-1, keepdims=True))
        rescale = jnp.exp(m_old - m_new)
        p = adj * jnp.exp(sc - m_new)                      # edge-count weights
        l_sc[...] = rescale * l_sc[...] + jnp.sum(p, axis=-1, keepdims=True)
        acc_sc[...] = rescale * acc_sc[...] + jnp.dot(
            p.astype(jnp.bfloat16), h, preferred_element_type=jnp.float32)
        m_sc[...] = m_new

    @pl.when(jnp.logical_and(r == nr - 1, s == ns - 1))
    def _finish():
        l = l_sc[...]
        denom = jnp.where(l > 0, l, 1.0)                   # isolated rows -> bias
        out = acc_sc[...] / denom + b_ref[...]             # exact div (once per tile)
        if apply_relu:
            out = jnp.maximum(out, 0.0)
        o_ref[...] = out.astype(o_ref.dtype)


# ----------------------------------------------------------------------------
# Adjacency-derived block schedule (built ONCE per forward, reused by layers)
# ----------------------------------------------------------------------------
def build_adjacency_schedule(adj_i8, *, t_dst=T_DST, t_src=T_SRC):
    """nnz flags + DMA-skip block coordinates, grid order (dst, rel, src)."""
    r_dim, n, _ = adj_i8.shape
    nd, ns = n // t_dst, n // t_src
    nz = (adj_i8 != 0).reshape(r_dim, nd, t_dst, ns, t_src).any(axis=(2, 4))
    nz = jnp.transpose(nz, (1, 0, 2)).reshape(-1)          # [nd * R * ns]
    steps = jnp.arange(nz.shape[0], dtype=jnp.int32)
    last_nz = jax.lax.cummax(jnp.where(nz, steps, -1), axis=0)
    eff = jnp.maximum(last_nz, 0)                          # fallback: block 0
    eff_d = (eff // (r_dim * ns)).astype(jnp.int32)
    eff_r = ((eff // ns) % r_dim).astype(jnp.int32)
    eff_s = (eff % ns).astype(jnp.int32)
    return nz.astype(jnp.int32), eff_r, eff_d, eff_s


def _agg_vmem_limit_bytes(n, r_dim, cout, t_dst, t_src):
    lane = lambda c: _round_up(c, 128)
    sub = lambda c, m=8: _round_up(c, m)
    resident = (r_dim * sub(n, 16) * lane(cout) * 2        # H (bf16)
                + r_dim * sub(n) * lane(1) * 4             # qi
                + r_dim * sub(1) * lane(n) * 4             # kj
                + sub(1) * lane(cout) * 4)                 # bias
    streamed = t_dst * t_src + sub(t_dst) * lane(cout) * 4  # adj + out tile
    scratch = 2 * sub(t_dst) * lane(1) * 4 + sub(t_dst) * lane(cout) * 4
    need = 2 * (resident + streamed) + scratch + (2 << 20)  # dbl buffers + margin
    return int(min(64 * 1024 * 1024, max(16 * 1024 * 1024, need)))


# ----------------------------------------------------------------------------
# One RGATConv layer (x and adj already padded to a multiple of the tiles)
# ----------------------------------------------------------------------------
def rgat_conv_layer(x, adj_i8, schedule, waug_bf16, bias, *, cout, apply_relu,
                    t_dst=T_DST, t_src=T_SRC, t_node=T_NODE):
    n, cin = x.shape
    r_dim = adj_i8.shape[0]
    kj_pad = waug_bf16.shape[1] - r_dim * cout - r_dim
    n_node_tiles = n // t_node
    nd, ns = n // t_dst, n // t_src

    # ---- kernel 1: relation-fused transform + fused attention projections
    kernel1 = functools.partial(_transform_kernel, r_dim=r_dim, cout=cout,
                                kj_pad=kj_pad)
    h, qi, kj = pl.pallas_call(
        kernel1,
        out_shape=(jax.ShapeDtypeStruct((r_dim, n, cout), jnp.bfloat16),
                   jax.ShapeDtypeStruct((r_dim, n, 1), jnp.float32),
                   jax.ShapeDtypeStruct((r_dim, 1, n), jnp.float32)),
        grid_spec=pltpu.PrefetchScalarGridSpec(
            num_scalar_prefetch=0,
            grid=(n_node_tiles,),
            in_specs=[
                pl.BlockSpec((t_node, cin), lambda i: (i, 0)),       # x tile
                pl.BlockSpec(waug_bf16.shape, lambda i: (0, 0)),     # fused W
            ],
            out_specs=(
                pl.BlockSpec((r_dim, t_node, cout), lambda i: (0, i, 0)),
                pl.BlockSpec((r_dim, t_node, 1), lambda i: (0, i, 0)),
                pl.BlockSpec((r_dim, 1, t_node), lambda i: (0, 0, i)),
            ),
        ),
        compiler_params=pltpu.CompilerParams(
            dimension_semantics=("parallel",)),
    )(x.astype(jnp.bfloat16), waug_bf16)

    nnz, eff_r, eff_d, eff_s = schedule

    def _adj_index_map(d, r, s, nnz_ref, eff_r_ref, eff_d_ref, eff_s_ref):
        # Repeat the previous non-empty block's coordinates for empty blocks
        # so the pipeline skips the adjacency DMA entirely.
        t = (d * r_dim + r) * ns + s
        return (eff_r_ref[t], eff_d_ref[t], eff_s_ref[t])

    const3 = lambda d, r, s, *_: (0, 0, 0)

    kernel2 = functools.partial(_aggregate_kernel, apply_relu=apply_relu)
    return pl.pallas_call(
        kernel2,
        out_shape=jax.ShapeDtypeStruct((n, cout), jnp.float32),
        grid_spec=pltpu.PrefetchScalarGridSpec(
            num_scalar_prefetch=4,
            grid=(nd, r_dim, ns),
            in_specs=[
                pl.BlockSpec((r_dim, n, cout), const3),             # H resident
                pl.BlockSpec((r_dim, n, 1), const3),                # qi resident
                pl.BlockSpec((r_dim, 1, n), const3),                # kj resident
                pl.BlockSpec((1, t_dst, t_src), _adj_index_map),    # adj stream
                pl.BlockSpec((1, cout), lambda d, r, s, *_: (0, 0)),  # bias
            ],
            out_specs=pl.BlockSpec((t_dst, cout), lambda d, r, s, *_: (d, 0)),
            scratch_shapes=[
                pltpu.VMEM((t_dst, 1), jnp.float32),      # running max
                pltpu.VMEM((t_dst, 1), jnp.float32),      # running sum(exp)
                pltpu.VMEM((t_dst, cout), jnp.float32),   # running weighted sum
            ],
        ),
        compiler_params=pltpu.CompilerParams(
            dimension_semantics=("parallel", "arbitrary", "arbitrary"),
            vmem_limit_bytes=_agg_vmem_limit_bytes(n, r_dim, cout, t_dst,
                                                   t_src)),
    )(nnz, eff_r, eff_d, eff_s, h, qi, kj, adj_i8, bias)


# ----------------------------------------------------------------------------
# Model: parameter init + forward (3 RGATConv layers, relu between)
# ----------------------------------------------------------------------------
def init_rgat_params(key, in_ch, hid_ch, out_ch, num_relations, num_bases,
                     n_layers=3):
    dims = [(in_ch, hid_ch)] + [(hid_ch, hid_ch)] * (n_layers - 2) \
           + [(hid_ch, out_ch)]
    params = []
    for (cin, cout) in dims:
        key, k1, k2, k3, k4, k5 = jax.random.split(key, 6)
        glorot = lambda kk, shape: jax.random.normal(kk, shape, jnp.float32) \
            * jnp.sqrt(2.0 / (shape[-2] + shape[-1]))
        params.append(dict(
            att=glorot(k1, (num_relations, num_bases)),
            basis=glorot(k2, (num_bases, cin, cout)),
            q=glorot(k3, (cout, 1)),
            k=glorot(k4, (cout, 1)),
            bias=0.1 * jax.random.normal(k5, (1, cout), jnp.float32),
        ))
    return params


def _fused_weight_slab(p, r_dim):
    """[cin, R*cout + R + kj_pad] bf16 slab:
       per-relation W blocks, fused dst projections W_r q, fused (lane padded)
       src projections W_r k."""
    nb, cin, cout = p["basis"].shape
    w = jnp.matmul(p["att"], p["basis"].reshape(nb, -1)).reshape(
        r_dim, cin, cout)                                   # basis decomposition
    wq = jnp.einsum("rio,oh->rih", w, p["q"])               # [R, cin, 1]
    wk = jnp.einsum("rio,oh->rih", w, p["k"])               # [R, cin, 1]
    kj_pad = _round_up(r_dim, 8)
    w_cat = jnp.transpose(w, (1, 0, 2)).reshape(cin, r_dim * cout)
    wq_cat = jnp.transpose(wq, (1, 0, 2)).reshape(cin, r_dim)
    wk_cat = jnp.transpose(wk, (1, 0, 2)).reshape(cin, r_dim)
    wk_cat = jnp.pad(wk_cat, ((0, 0), (0, kj_pad - r_dim)))
    return jnp.concatenate([w_cat, wq_cat, wk_cat], axis=1).astype(jnp.bfloat16)


def rgat_forward(params, x, adj_i8, *, t_dst=T_DST, t_src=T_SRC):
    n_raw = x.shape[0]
    r_dim = adj_i8.shape[0]
    n_layers = len(params)

    # Pad the node count once to a multiple of the tiles; padded rows have no
    # edges, never influence real nodes, and are sliced off at the end.
    tile = max(t_dst, t_src, T_NODE)
    n_pad = _round_up(n_raw, tile)
    x = jnp.pad(x, ((0, n_pad - n_raw), (0, 0)))
    adj_i8 = jnp.pad(adj_i8, ((0, 0), (0, n_pad - n_raw), (0, n_pad - n_raw)))

    # Adjacency is layer-independent: build the block schedule only once.
    schedule = build_adjacency_schedule(adj_i8, t_dst=t_dst, t_src=t_src)

    for i, p in enumerate(params):
        cout = p["basis"].shape[-1]
        waug = _fused_weight_slab(p, r_dim)
        x = rgat_conv_layer(x, adj_i8, schedule, waug, p["bias"], cout=cout,
                            apply_relu=(i < n_layers - 1),
                            t_dst=t_dst, t_src=t_src)
        # F.dropout(p=0.4) -> identity (eval mode)
    return x[:n_raw]


# ----------------------------------------------------------------------------
# Pure-JAX reference (edge-list based, mirrors PyG RGATConv message/softmax)
# ----------------------------------------------------------------------------
def rgat_reference(params, x, edge_index, edge_type, num_relations):
    src, dst = edge_index[0], edge_index[1]
    n = x.shape[0]
    n_layers = len(params)
    for i, p in enumerate(params):
        nb, cin, cout = p["basis"].shape
        w = jnp.matmul(p["att"], p["basis"].reshape(nb, -1)).reshape(
            num_relations, cin, cout)
        we = w[edge_type]                                   # [E, cin, cout]
        xi = jnp.einsum("ec,eco->eo", x[dst], we)
        xj = jnp.einsum("ec,eco->eo", x[src], we)
        qi = xi @ p["q"]
        kj = xj @ p["k"]
        s = (qi + kj)[:, 0]
        s = jnp.where(s >= 0, s, NEG_SLOPE * s)
        seg_max = jnp.full((n,), -jnp.inf, jnp.float32).at[dst].max(s)
        e = jnp.exp(s - seg_max[dst])
        seg_sum = jnp.zeros((n,), jnp.float32).at[dst].add(e)
        alpha = e / seg_sum[dst]
        msg = alpha[:, None] * xj
        out = jnp.zeros((n, cout), jnp.float32).at[dst].add(msg)
        x = out + p["bias"][0]
        if i < n_layers - 1:
            x = jnp.maximum(x, 0.0)
    return x


if __name__ == "__main__":
    key = jax.random.PRNGKey(0)
    N, E = 48, 160
    in_channels, hidden_channels, out_channels = 8, 16, 8
    num_relations, num_bases, n_layers = 3, 2, 3

    k_x, k_s, k_d, k_t, k_p = jax.random.split(key, 5)
    x = jax.random.normal(k_x, (N, in_channels), jnp.float32)
    src = jax.random.randint(k_s, (E,), 0, N)
    dst = jax.random.randint(k_d, (E,), 0, N)
    edge_index = jnp.stack([src, dst], axis=0)              # [2, E]
    edge_type = jax.random.randint(k_t, (E,), 0, num_relations)

    # Densify edge list into per-relation int8 adjacency counts (glue).
    adj_counts = jnp.zeros((num_relations, N, N), jnp.int32).at[
        edge_type, dst, src].add(1)
    assert int(jnp.max(adj_counts)) <= 127, "int8 adjacency count overflow"
    adj_i8 = adj_counts.astype(jnp.int8)

    params = init_rgat_params(k_p, in_channels, hidden_channels, out_channels,
                              num_relations, num_bases, n_layers)

    out = jax.block_until_ready(rgat_forward(params, x, adj_i8))

    ref = rgat_reference(params, x, edge_index, edge_type, num_relations)
    assert out.shape == (N, out_channels)
    err = float(jnp.max(jnp.abs(out - ref)))
    assert jnp.allclose(out, ref, rtol=3e-2, atol=3e-2), f"max abs diff {err}"

    print("KERNEL_OK")
</pallas_src>

<mosaic_0001>
module attributes {stable_mosaic.version = 11 : i64} {
  func.func @_transform_kernel(%arg0: i32, %arg1: memref<128x8xbf16, #tpu.memory_space<vmem>>, %arg2: memref<8x59xbf16, #tpu.memory_space<vmem>>, %arg3: memref<3x128x16xbf16, #tpu.memory_space<vmem>>, %arg4: memref<3x128x1xf32, #tpu.memory_space<vmem>>, %arg5: memref<3x1x128xf32, #tpu.memory_space<vmem>>) attributes {dimension_semantics = [#tpu.dimension_semantics<parallel>], iteration_bounds = array<i64: 1>, scalar_prefetch = 0 : i64, scratch_operands = 0 : i64, tpu.core_type = #tpu.core_type<tc>, window_params = [{transform_indices = @transform_0, window_bounds = array<i64: 128, 8>}, {pipeline_mode = #tpu.pipeline_mode<synchronous>, transform_indices = @transform_1, window_bounds = array<i64: 8, 59>}, {transform_indices = @transform_2, window_bounds = array<i64: 3, 128, 16>}, {transform_indices = @transform_3, window_bounds = array<i64: 3, 128, 1>}, {transform_indices = @transform_4, window_bounds = array<i64: 3, 1, 128>}]} {
    %c0 = arith.constant 0 : index
    %c0_0 = arith.constant 0 : index
    %0 = vector.load %arg1[%c0, %c0_0] : memref<128x8xbf16, #tpu.memory_space<vmem>>, vector<128x8xbf16>
    %c0_1 = arith.constant 0 : index
    %c0_2 = arith.constant 0 : index
    %1 = vector.load %arg2[%c0_1, %c0_2] : memref<8x59xbf16, #tpu.memory_space<vmem>>, vector<8x59xbf16>
    %cst = arith.constant dense<0.000000e+00> : vector<128x59xf32>
    %2 = tpu.matmul %0, %1, %cst {dimension_numbers = #tpu.dot_dimension_numbers<[1], [0], [0], [1], [0, 0, 1, 1], [], []>} : vector<128x8xbf16>, vector<8x59xbf16>, vector<128x59xf32> -> vector<128x59xf32>
    %3 = vector.extract_strided_slice %2 {offsets = [0, 0], sizes = [128, 16], strides = [1, 1]} : vector<128x59xf32> to vector<128x16xf32>
    %4 = arith.truncf %3 : vector<128x16xf32> to vector<128x16xbf16>
    %c0_3 = arith.constant 0 : index
    %c0_4 = arith.constant 0 : index
    %c0_5 = arith.constant 0 : index
    %5 = vector.load %arg3[%c0_3, %c0_4, %c0_5] : memref<3x128x16xbf16, #tpu.memory_space<vmem>>, vector<1x128x16xbf16>
    %6 = vector.shape_cast %5 : vector<1x128x16xbf16> to vector<128x16xbf16>
    %7 = vector.shape_cast %4 : vector<128x16xbf16> to vector<1x128x16xbf16>
    tpu.vector_store %arg3[%c0_3, %c0_4, %c0_5], %7 {strides = array<i32>} : memref<3x128x16xbf16, #tpu.memory_space<vmem>>, vector<1x128x16xbf16>,
    %8 = vector.extract_strided_slice %2 {offsets = [0, 48], sizes = [128, 1], strides = [1, 1]} : vector<128x59xf32> to vector<128x1xf32>
    %c0_6 = arith.constant 0 : index
    %c0_7 = arith.constant 0 : index
    %c0_8 = arith.constant 0 : index
    %9 = vector.load %arg4[%c0_6, %c0_7, %c0_8] : memref<3x128x1xf32, #tpu.memory_space<vmem>>, vector<1x128x1xf32>
    %10 = vector.shape_cast %9 : vector<1x128x1xf32> to vector<128x1xf32>
    %11 = vector.shape_cast %8 : vector<128x1xf32> to vector<1x128x1xf32>
    tpu.vector_store %arg4[%c0_6, %c0_7, %c0_8], %11 {strides = array<i32>} : memref<3x128x1xf32, #tpu.memory_space<vmem>>, vector<1x128x1xf32>,
    %12 = vector.extract_strided_slice %2 {offsets = [0, 16], sizes = [128, 16], strides = [1, 1]} : vector<128x59xf32> to vector<128x16xf32>
    %13 = arith.truncf %12 : vector<128x16xf32> to vector<128x16xbf16>
    %c1 = arith.constant 1 : index
    %c0_9 = arith.constant 0 : index
    %c0_10 = arith.constant 0 : index
    %14 = vector.load %arg3[%c1, %c0_9, %c0_10] : memref<3x128x16xbf16, #tpu.memory_space<vmem>>, vector<1x128x16xbf16>
    %15 = vector.shape_cast %14 : vector<1x128x16xbf16> to vector<128x16xbf16>
    %16 = vector.shape_cast %13 : vector<128x16xbf16> to vector<1x128x16xbf16>
    tpu.vector_store %arg3[%c1, %c0_9, %c0_10], %16 {strides = array<i32>} : memref<3x128x16xbf16, #tpu.memory_space<vmem>>, vector<1x128x16xbf16>,
    %17 = vector.extract_strided_slice %2 {offsets = [0, 49], sizes = [128, 1], strides = [1, 1]} : vector<128x59xf32> to vector<128x1xf32>
    %c1_11 = arith.constant 1 : index
    %c0_12 = arith.constant 0 : index
    %c0_13 = arith.constant 0 : index
    %18 = vector.load %arg4[%c1_11, %c0_12, %c0_13] : memref<3x128x1xf32, #tpu.memory_space<vmem>>, vector<1x128x1xf32>
    %19 = vector.shape_cast %18 : vector<1x128x1xf32> to vector<128x1xf32>
    %20 = vector.shape_cast %17 : vector<128x1xf32> to vector<1x128x1xf32>
    tpu.vector_store %arg4[%c1_11, %c0_12, %c0_13], %20 {strides = array<i32>} : memref<3x128x1xf32, #tpu.memory_space<vmem>>, vector<1x128x1xf32>,
    %21 = vector.extract_strided_slice %2 {offsets = [0, 32], sizes = [128, 16], strides = [1, 1]} : vector<128x59xf32> to vector<128x16xf32>
    %22 = arith.truncf %21 : vector<128x16xf32> to vector<128x16xbf16>
    %c2 = arith.constant 2 : index
    %c0_14 = arith.constant 0 : index
    %c0_15 = arith.constant 0 : index
    %23 = vector.load %arg3[%c2, %c0_14, %c0_15] : memref<3x128x16xbf16, #tpu.memory_space<vmem>>, vector<1x128x16xbf16>
    %24 = vector.shape_cast %23 : vector<1x128x16xbf16> to vector<128x16xbf16>
    %25 = vector.shape_cast %22 : vector<128x16xbf16> to vector<1x128x16xbf16>
    tpu.vector_store %arg3[%c2, %c0_14, %c0_15], %25 {strides = array<i32>} : memref<3x128x16xbf16, #tpu.memory_space<vmem>>, vector<1x128x16xbf16>,
    %26 = vector.extract_strided_slice %2 {offsets = [0, 50], sizes = [128, 1], strides = [1, 1]} : vector<128x59xf32> to vector<128x1xf32>
    %c2_16 = arith.constant 2 : index
    %c0_17 = arith.constant 0 : index
    %c0_18 = arith.constant 0 : index
    %27 = vector.load %arg4[%c2_16, %c0_17, %c0_18] : memref<3x128x1xf32, #tpu.memory_space<vmem>>, vector<1x128x1xf32>
    %28 = vector.shape_cast %27 : vector<1x128x1xf32> to vector<128x1xf32>
    %29 = vector.shape_cast %26 : vector<128x1xf32> to vector<1x128x1xf32>
    tpu.vector_store %arg4[%c2_16, %c0_17, %c0_18], %29 {strides = array<i32>} : memref<3x128x1xf32, #tpu.memory_space<vmem>>, vector<1x128x1xf32>,
    %30 = vector.extract_strided_slice %2 {offsets = [0, 51], sizes = [128, 8], strides = [1, 1]} : vector<128x59xf32> to vector<128x8xf32>
    %31 = tpu.transpose %30, [1, 0] : vector<128x8xf32> -> vector<8x128xf32>
    %32 = vector.extract_strided_slice %31 {offsets = [0, 0], sizes = [1, 128], strides = [1, 1]} : vector<8x128xf32> to vector<1x128xf32>
    %c0_19 = arith.constant 0 : index
    %c0_20 = arith.constant 0 : index
    %c0_21 = arith.constant 0 : index
    %33 = vector.load %arg5[%c0_19, %c0_20, %c0_21] : memref<3x1x128xf32, #tpu.memory_space<vmem>>, vector<1x1x128xf32>
    %34 = vector.shape_cast %33 : vector<1x1x128xf32> to vector<1x128xf32>
    %35 = vector.shape_cast %32 : vector<1x128xf32> to vector<1x1x128xf32>
    tpu.vector_store %arg5[%c0_19, %c0_20, %c0_21], %35 {strides = array<i32>} : memref<3x1x128xf32, #tpu.memory_space<vmem>>, vector<1x1x128xf32>,
    %36 = vector.extract_strided_slice %31 {offsets = [1, 0], sizes = [1, 128], strides = [1, 1]} : vector<8x128xf32> to vector<1x128xf32>
    %c1_22 = arith.constant 1 : index
    %c0_23 = arith.constant 0 : index
    %c0_24 = arith.constant 0 : index
    %37 = vector.load %arg5[%c1_22, %c0_23, %c0_24] : memref<3x1x128xf32, #tpu.memory_space<vmem>>, vector<1x1x128xf32>
    %38 = vector.shape_cast %37 : vector<1x1x128xf32> to vector<1x128xf32>
    %39 = vector.shape_cast %36 : vector<1x128xf32> to vector<1x1x128xf32>
    tpu.vector_store %arg5[%c1_22, %c0_23, %c0_24], %39 {strides = array<i32>} : memref<3x1x128xf32, #tpu.memory_space<vmem>>, vector<1x1x128xf32>,
    %40 = vector.extract_strided_slice %31 {offsets = [2, 0], sizes = [1, 128], strides = [1, 1]} : vector<8x128xf32> to vector<1x128xf32>
    %c2_25 = arith.constant 2 : index
    %c0_26 = arith.constant 0 : index
    %c0_27 = arith.constant 0 : index
    %41 = vector.load %arg5[%c2_25, %c0_26, %c0_27] : memref<3x1x128xf32, #tpu.memory_space<vmem>>, vector<1x1x128xf32>
    %42 = vector.shape_cast %41 : vector<1x1x128xf32> to vector<1x128xf32>
    %43 = vector.shape_cast %40 : vector<1x128xf32> to vector<1x1x128xf32>
    tpu.vector_store %arg5[%c2_25, %c0_26, %c0_27], %43 {strides = array<i32>} : memref<3x1x128xf32, #tpu.memory_space<vmem>>, vector<1x1x128xf32>,
    return
  }
  func.func @transform_0(%arg0: i32) -> (i32, i32) {
    %c0_i32 = arith.constant 0 : i32
    %c0_i32_0 = arith.constant 0 : i32
    return %arg0, %c0_i32 : i32, i32
  }
  func.func @transform_1(%arg0: i32) -> (i32, i32) {
    %c0_i32 = arith.constant 0 : i32
    %c0_i32_0 = arith.constant 0 : i32
    %c0_i32_1 = arith.constant 0 : i32
    return %c0_i32, %c0_i32_0 : i32, i32
  }
  func.func @transform_2(%arg0: i32) -> (i32, i32, i32) {
    %c0_i32 = arith.constant 0 : i32
    %c0_i32_0 = arith.constant 0 : i32
    %c0_i32_1 = arith.constant 0 : i32
    return %c0_i32, %arg0, %c0_i32_0 : i32, i32, i32
  }
  func.func @transform_3(%arg0: i32) -> (i32, i32, i32) {
    %c0_i32 = arith.constant 0 : i32
    %c0_i32_0 = arith.constant 0 : i32
    %c0_i32_1 = arith.constant 0 : i32
    return %c0_i32, %arg0, %c0_i32_0 : i32, i32, i32
  }
  func.func @transform_4(%arg0: i32) -> (i32, i32, i32) {
    %c0_i32 = arith.constant 0 : i32
    %c0_i32_0 = arith.constant 0 : i32
    %c0_i32_1 = arith.constant 0 : i32
    return %c0_i32, %c0_i32_0, %arg0 : i32, i32, i32
  }
}

</mosaic_0001>

<bundles_post_ra>
// kernel: tpu_custom_call.1
= control target key start
LH: loop header
LB: loop body
LE: loop exit
PB: predicated region body
PF: predicated region fallthrough
CT: control target
= control target key end

     0   :  { %vm98_vm0 = vcmask 1043456   ;;  %vm73_vm1 = vcmask 64512   ;;  %s1692_s0 = inlined_call_operand.vmem [shape: bf16[128,8], index: 0, kind: input, shape index: {}]   ;;  %s1693_s1 = inlined_call_operand.vmem [shape: bf16[8,59], index: 1, kind: input, shape index: {}]   ;;  %s1694_s2 = inlined_call_operand.vmem [shape: bf16[3,128,16], index: 2, kind: output, shape index: {0}]   ;;  %s1695_s3 = inlined_call_operand.vmem [shape: f32[3,128,1], index: 3, kind: output, shape index: {1}]   ;;  %s1696_s4 = inlined_call_operand.hbm [shape: f32[3,1,128], index: 4, kind: output, shape index: {2}]  }
   0x1   :  { %v32_v0 = vld [vmem:[%s1693_s1] sm:$0xf]  ;;  %v884_v4 = vld [vmem:[%s1692_s0 + $0x8] sm:$0xff]   ;;  %v886_v6 = vld [vmem:[%s1692_s0 + $0x10] sm:$0xff]  }
   0x2   :  { %v882_v1 = vld [vmem:[%s1692_s0] sm:$0xff]   ;;  %871 = vmatprep.subr.msk.bf16.mxu0 %vm98_vm0, %v32_v0  ;;  %872 = vmatprep.subr.msk.bf16.mxu1 %vm98_vm0, %v32_v0  ;;  %v100_v2 = vsel %vm98_vm0, %v32_v0, 0  ;;  %v885_v5 = vld [vmem:[%s1692_s0 + $0x28] sm:$0xff]   ;;  %v888_v7 = vld [vmem:[%s1692_s0 + $0x30] sm:$0xff]  }
   0x3   :  { %852 = vmatpush3.bf16.msra.mxu0 %v100_v2  ;;  %870 = vmatpush3.bf16.msra.mxu1 %v100_v2  ;;  %v883_v3 = vld [vmem:[%s1692_s0 + $0x20] sm:$0xff]  }
   0x4   :  { %853 = vmatprep.mubr.msk.bf16.mxu0 %vm73_vm1, %v882_v1  ;;  %861 = vmatprep.mubr.msk.bf16.mxu1 %vm73_vm1, %v883_v3 }
   0x6   :  { %854 = vmatmul.mubr.msk.bf16.vlgmr.msra.gmra.mxu0 %vm73_vm1, %v884_v4  ;;  %862 = vmatmul.mubr.msk.bf16.vlgmr.msra.gmra.mxu1 %vm73_vm1, %v885_v5 }
   0x7   :  { %857 = vmatprep.mubr.msk.bf16.mxu0 %vm73_vm1, %v886_v6 }
   0x8   :  { %10 = vsyncpa [#allocation3], 0  ;;  %v887_v8 = vld [vmem:[%s1692_s0 + $0x18] sm:$0xff]   ;;  %865 = vmatprep.mubr.msk.bf16.mxu1 %vm73_vm1, %v888_v7  ;;  %s912_s6 = smov 80   ;;  %vm263_vm2 = vcmask 125952   ;;  %s913_s12 = smov 79  }
   0x9   :  { %v889_v9 = vld [vmem:[%s1692_s0 + $0x38] sm:$0xff]   ;;  %s914_s28 = smov 77   ;;  %s915_s14 = smov 112   ;;  %vm344_vm3 = vcmask 7168  }
   0xa   :  { %s916_s15 = smov 96   ;;  %s917_s16 = smov 78  }
   0xb   :  { %s918_s13 = smov [#allocation2]  }
   0xc   :  { %s715_s17 = sshll.u32 %s918_s13, 4  ;;  %s716_s17 = int_to_ptr.vmem [resolvable:$true] %s715_s17 }
   0xd   :  { %s894_s18 = scalar_lea.vmem %s716_s17, 64  ;;  %p895_p1 = scmp.lt.s32.totalorder %s716_s17, %s716_s17 }
   0xe   :  { %858 = vmatmul.mubr.msk.bf16.gmra.mxu0 %vm73_vm1, %v887_v8  ;;  %866 = vmatmul.mubr.msk.bf16.gmra.mxu1 %vm73_vm1, %v889_v9 }
  0xc6   :  { %v981_v10 = vpop.f32.mrf.mxu0  ;;  %v983_v11 = vpop.f32.mrf.mxu1 }
  0xc7   :  { %300 = vrot.lane.b32.xlu1 %v981_v10, %s912_s6  ;;  %v989_v12 = vpack.c.bf16 %v981_v10, %v981_v10  ;;  %316 = vrot.lane.b32.xlu0 %v983_v11, %s912_s6  ;;  %v997_v14 = vpack.c.bf16 %v983_v11, %v983_v11 }
  0xc8   :  { %v993_v13 = vpop.f32.mrf.mxu0  ;;  %v999_v15 = vpop.f32.mrf.mxu1 }
  0xc9   :  { %266 = vst.msk [vmem:[%s1694_s2 + $0x8] sm:$0xf] %vm263_vm2, %v989_v12  ;;  %v1008_v16 = vpack.c.bf16 %v993_v13, %v993_v13  ;;  %274 = vst.msk [vmem:[%s1694_s2 + $0x28] sm:$0xf] %vm263_vm2, %v997_v14  ;;  %v1019_v18 = vpack.c.bf16 %v999_v15, %v999_v15 }
  0xca   :  { %v1010_v17 = vpop.f32.mrf.mxu0  ;;  %v1021_v19 = vpop.f32.mrf.mxu1 }
  0xcb   :  { %302 = vrot.lane.b32.xlu1 %v1010_v17, %s912_s6  ;;  %v829_v20 = vpack.c.bf16 %v1010_v17, %v1010_v17  ;;  %264 = vst.msk [vmem:[%s1694_s2] sm:$0xf] %vm263_vm2, %v1008_v16  ;;  %430 = vrot.lane.b32.xlu0 %v981_v10, %s913_s12  ;;  %v837_v22 = vpack.c.bf16 %v1021_v19, %v1021_v19  ;;  %272 = vst.msk [vmem:[%s1694_s2 + $0x20] sm:$0xf] %vm263_vm2, %v1019_v18 }
  0xcc   :  { %v1034_v21 = vpop.f32.mrf.mxu0  ;;  %v1043_v23 = vpop.f32.mrf.mxu1 }
  0xcd   :  { %267 = vst.msk [vmem:[%s1694_s2 + $0xc] sm:$0xf] %vm263_vm2, %v829_v20  ;;  %v1051_v24 = vpack.c.bf16 %v1034_v21, %v1034_v21  ;;  %275 = vst.msk [vmem:[%s1694_s2 + $0x2c] sm:$0xf] %vm263_vm2, %v837_v22  ;;  %v1059_v25 = vpack.c.bf16 %v1043_v23, %v1043_v23 }
  0xce   :  { %v1061_v26 = vpop.f32.mrf.mxu0  ;;  %v1070_v27 = vpop.f32.mrf.mxu1 }
  0xcf   :  { %318 = vrot.lane.b32.xlu1 %v1021_v19, %s912_s6  ;;  %265 = vst.msk [vmem:[%s1694_s2 + $0x4] sm:$0xf] %vm263_vm2, %v1051_v24  ;;  %v1074_v28 = vpack.c.bf16 %v1061_v26, %v1061_v26  ;;  %446 = vrot.lane.b32.xlu0 %v983_v11, %s913_s12  ;;  %273 = vst.msk [vmem:[%s1694_s2 + $0x24] sm:$0xf] %vm263_vm2, %v1059_v25  ;;  %v1087_v30 = vpack.c.bf16 %v1070_v27, %v1070_v27 }
  0xd0   :  { %v1083_v29 = vpop.f32.mrf.mxu0  ;;  %v1089_v31 = vpop.f32.mrf.mxu1 }
  0xd1   :  { %270 = vst.msk [vmem:[%s1694_s2 + $0x18] sm:$0xf] %vm263_vm2, %v1074_v28  ;;  %v1098_v32 = vpack.c.bf16 %v1083_v29, %v1083_v29  ;;  %278 = vst.msk [vmem:[%s1694_s2 + $0x38] sm:$0xf] %vm263_vm2, %v1087_v30  ;;  %v1109_v34 = vpack.c.bf16 %v1089_v31, %v1089_v31 }
  0xd2   :  { %v1100_v33 = vpop.f32.mrf.mxu0  ;;  %v1113_v35 = vpop.f32.mrf.mxu1 }
  0xd3   :  { %432 = vrot.lane.b32.xlu1 %v1010_v17, %s913_s12  ;;  %v1117_v36 = vpack.c.bf16 %v1100_v33, %v1100_v33  ;;  %268 = vst.msk [vmem:[%s1694_s2 + $0x10] sm:$0xf] %vm263_vm2, %v1098_v32  ;;  %625 = vrot.lane.b32.xlu0 %v981_v10, %s914_s28  ;;  %v1130_v38 = vpack.c.bf16 %v1113_v35, %v1113_v35  ;;  %276 = vst.msk [vmem:[%s1694_s2 + $0x30] sm:$0xf] %vm263_vm2, %v1109_v34 }
  0xd4   :  { %v1126_v37 = vpop.f32.mrf.mxu0  ;;  %v1137_v39 = vpop.f32.mrf.mxu1 }
  0xd5   :  { %271 = vst.msk [vmem:[%s1694_s2 + $0x1c] sm:$0xf] %vm263_vm2, %v1117_v36  ;;  %v1146_v40 = vpack.c.bf16 %v1126_v37, %v1126_v37  ;;  %279 = vst.msk [vmem:[%s1694_s2 + $0x3c] sm:$0xf] %vm263_vm2, %v1130_v38  ;;  %v1155_v41 = vpack.c.bf16 %v1137_v39, %v1137_v39 }
  0xd7   :  { %448 = vrot.lane.b32.xlu1 %v1021_v19, %s913_s12  ;;  %269 = vst.msk [vmem:[%s1694_s2 + $0x14] sm:$0xf] %vm263_vm2, %v1146_v40  ;;  %641 = vrot.lane.b32.xlu0 %v983_v11, %s914_s28  ;;  %277 = vst.msk [vmem:[%s1694_s2 + $0x34] sm:$0xf] %vm263_vm2, %v1155_v41 }
  0xdb   :  { %627 = vrot.lane.b32.xlu1 %v1010_v17, %s914_s28  ;;  %296 = vrot.lane.b32.xlu0 %v993_v13, %s912_s6 }
  0xdf   :  { %643 = vrot.lane.b32.xlu1 %v1021_v19, %s914_s28  ;;  %312 = vrot.lane.b32.xlu0 %v999_v15, %s912_s6 }
  0xe3   :  { %314 = vrot.lane.b32.xlu1 %v1043_v23, %s912_s6  ;;  %365 = vrot.lane.b32.xlu0 %v989_v12, %s915_s14 }
  0xe7   :  { %367 = vrot.lane.b32.xlu1 %v829_v20, %s915_s14  ;;  %381 = vrot.lane.b32.xlu0 %v997_v14, %s915_s14 }
  0xeb   :  { %383 = vrot.lane.b32.xlu1 %v837_v22, %s915_s14  ;;  %426 = vrot.lane.b32.xlu0 %v993_v13, %s913_s12 }
  0xef   :  { %428 = vrot.lane.b32.xlu1 %v1034_v21, %s913_s12  ;;  %442 = vrot.lane.b32.xlu0 %v999_v15, %s913_s12 }
  0xf3   :  { %444 = vrot.lane.b32.xlu1 %v1043_v23, %s913_s12  ;;  %495 = vrot.lane.b32.xlu0 %v989_v12, %s916_s15 }
  0xf7   :  { %497 = vrot.lane.b32.xlu1 %v829_v20, %s916_s15  ;;  %621 = vrot.lane.b32.xlu0 %v993_v13, %s914_s28 }
  0xfb   :  { %623 = vrot.lane.b32.xlu1 %v1034_v21, %s914_s28  ;;  %637 = vrot.lane.b32.xlu0 %v999_v15, %s914_s28 }
  0xff   :  { %639 = vrot.lane.b32.xlu1 %v1043_v23, %s914_s28  ;;  %511 = vrot.lane.b32.xlu0 %v997_v14, %s916_s15 }
 0x103   :  { %513 = vrot.lane.b32.xlu1 %v837_v22, %s916_s15  ;;  %556 = vrot.lane.b32.xlu0 %v993_v13, %s917_s16 }
 0x107   :  { %363 = vrot.lane.b32.xlu1 %v1051_v24, %s915_s14  ;;  %361 = vrot.lane.b32.xlu0 %v1008_v16, %s915_s14 }
 0x10b   :  { %379 = vrot.lane.b32.xlu1 %v1059_v25, %s915_s14  ;;  %377 = vrot.lane.b32.xlu0 %v1019_v18, %s915_s14 }
 0x10f   :  { %493 = vrot.lane.b32.xlu1 %v1051_v24, %s916_s15  ;;  %491 = vrot.lane.b32.xlu0 %v1008_v16, %s916_s15 }
 0x113   :  { %509 = vrot.lane.b32.xlu1 %v1059_v25, %s916_s15  ;;  %507 = vrot.lane.b32.xlu0 %v1019_v18, %s916_s15 }
 0x117   :  { %310 = vrot.lane.b32.xlu1 %v1100_v33, %s912_s6  ;;  %298 = vrot.lane.b32.xlu0 %v1034_v21, %s912_s6 }
 0x11b   :  { %326 = vrot.lane.b32.xlu1 %v1113_v35, %s912_s6  ;;  %308 = vrot.lane.b32.xlu0 %v1061_v26, %s912_s6 }
 0x11f   :  { %440 = vrot.lane.b32.xlu1 %v1100_v33, %s913_s12  ;;  %324 = vrot.lane.b32.xlu0 %v1070_v27, %s912_s6 }
 0x123   :  { %456 = vrot.lane.b32.xlu1 %v1113_v35, %s913_s12  ;;  %438 = vrot.lane.b32.xlu0 %v1061_v26, %s913_s12 }
 0x127   :  { %635 = vrot.lane.b32.xlu1 %v1100_v33, %s914_s28  ;;  %454 = vrot.lane.b32.xlu0 %v1070_v27, %s913_s12 }
 0x12b   :  { %651 = vrot.lane.b32.xlu1 %v1113_v35, %s914_s28  ;;  %633 = vrot.lane.b32.xlu0 %v1061_v26, %s914_s28 }
 0x12f   :  { %306 = vrot.lane.b32.xlu1 %v1126_v37, %s912_s6  ;;  %649 = vrot.lane.b32.xlu0 %v1070_v27, %s914_s28 }
 0x133   :  { %322 = vrot.lane.b32.xlu1 %v1137_v39, %s912_s6  ;;  %304 = vrot.lane.b32.xlu0 %v1083_v29, %s912_s6 }
 0x137   :  { %375 = vrot.lane.b32.xlu1 %v1117_v36, %s915_s14  ;;  %320 = vrot.lane.b32.xlu0 %v1089_v31, %s912_s6 }
 0x139   :  { %v301_v42 = vpop.permute.xlu1 %300  ;;  %v317_v43 = vpop.permute.xlu0 %316 }
 0x13a   :  { %347 = vst.msk [vmem:[%s1695_s3 + $0x10] sm:$0xff] %vm344_vm3, %v301_v42  ;;  %355 = vst.msk [vmem:[%s1695_s3 + $0x50] sm:$0xff] %vm344_vm3, %v317_v43 }
 0x13b   :  { %391 = vrot.lane.b32.xlu1 %v1130_v38, %s915_s14  ;;  %373 = vrot.lane.b32.xlu0 %v1074_v28, %s915_s14 }
 0x13d   :  { %v303_v44 = vpop.permute.xlu1 %302  ;;  %v431_v45 = vpop.permute.xlu0 %430 }
 0x13e   :  { %348 = vst.msk [vmem:[%s1695_s3 + $0x18] sm:$0xff] %vm344_vm3, %v303_v44  ;;  %780 = vst.msk [vmem:[%s1695_s3 + $0x90] sm:$0xff] %vm344_vm3, %v431_v45 }
 0x13f   :  { %436 = vrot.lane.b32.xlu1 %v1126_v37, %s913_s12  ;;  %389 = vrot.lane.b32.xlu0 %v1087_v30, %s915_s14 }
 0x141   :  { %v319_v46 = vpop.permute.xlu1 %318  ;;  %v447_v47 = vpop.permute.xlu0 %446 }
 0x142   :  { %356 = vst.msk [vmem:[%s1695_s3 + $0x58] sm:$0xff] %vm344_vm3, %v319_v46  ;;  %788 = vst.msk [vmem:[%s1695_s3 + $0xd0] sm:$0xff] %vm344_vm3, %v447_v47 }
 0x143   :  { %452 = vrot.lane.b32.xlu1 %v1137_v39, %s913_s12  ;;  %434 = vrot.lane.b32.xlu0 %v1083_v29, %s913_s12 }
 0x145   :  { %v433_v48 = vpop.permute.xlu1 %432  ;;  %v1299_v49 = vpop.permute.xlu0 %625 }
 0x146   :  { %781 = vst.msk [vmem:[%s1695_s3 + $0x98] sm:$0xff] %vm344_vm3, %v433_v48 }
 0x147   :  { %505 = vrot.lane.b32.xlu1 %v1117_v36, %s916_s15  ;;  %450 = vrot.lane.b32.xlu0 %v1089_v31, %s913_s12 }
 0x149   :  { %v449_v50 = vpop.permute.xlu1 %448  ;;  %v1309_v51 = vpop.permute.xlu0 %641 }
 0x14a   :  { %789 = vst.msk [vmem:[%s1695_s3 + $0xd8] sm:$0xff] %vm344_vm3, %v449_v50 }
 0x14b   :  { %631 = vrot.lane.b32.xlu1 %v1126_v37, %s914_s28  ;;  %503 = vrot.lane.b32.xlu0 %v1074_v28, %s916_s15 }
 0x14d   :  { %v1319_v52 = vpop.permute.xlu1 %627  ;;  %v297_v53 = vpop.permute.xlu0 %296 }
 0x14e   :  { %345 = vst.msk [vmem:[%s1695_s3] sm:$0xff] %vm344_vm3, %v297_v53 }
 0x14f   :  { %558 = vrot.lane.b32.xlu1 %v1034_v21, %s917_s16  ;;  %629 = vrot.lane.b32.xlu0 %v1083_v29, %s914_s28 }
 0x151   :  { %v1329_v54 = vpop.permute.xlu1 %643  ;;  %v313_v55 = vpop.permute.xlu0 %312 }
 0x152   :  { %353 = vst.msk [vmem:[%s1695_s3 + $0x40] sm:$0xff] %vm344_vm3, %v313_v55 }
 0x153   :  { %562 = vrot.lane.b32.xlu1 %v1010_v17, %s917_s16  ;;  %645 = vrot.lane.b32.xlu0 %v1089_v31, %s914_s28 }
 0x155   :  { %v315_v56 = vpop.permute.xlu1 %314  ;;  %v366_v57 = vpop.permute.xlu0 %365 }
 0x156   :  { %354 = vst.msk [vmem:[%s1695_s3 + $0x48] sm:$0xff] %vm344_vm3, %v315_v56 }
 0x157   :  { %764 = vst.msk [vmem:[%s1694_s2 + $0x48] sm:$0xf] %vm263_vm2, %v366_v57  ;;  %570 = vrot.lane.b32.xlu1 %v1100_v33, %s917_s16  ;;  %519 = vrot.lane.b32.xlu0 %v1087_v30, %s916_s15 }
 0x159   :  { %v368_v58 = vpop.permute.xlu1 %367  ;;  %v382_v59 = vpop.permute.xlu0 %381 }
 0x15a   :  { %765 = vst.msk [vmem:[%s1694_s2 + $0x4c] sm:$0xf] %vm263_vm2, %v368_v58  ;;  %772 = vst.msk [vmem:[%s1694_s2 + $0x68] sm:$0xf] %vm263_vm2, %v382_v59 }
 0x15b   :  { %647 = vrot.lane.b32.xlu1 %v1137_v39, %s914_s28  ;;  %369 = vrot.lane.b32.xlu0 %v1098_v32, %s915_s14 }
 0x15d   :  { %v384_v60 = vpop.permute.xlu1 %383  ;;  %v427_v61 = vpop.permute.xlu0 %426 }
 0x15e   :  { %773 = vst.msk [vmem:[%s1694_s2 + $0x6c] sm:$0xf] %vm263_vm2, %v384_v60 }
 0x15f   :  { %778 = vst.msk [vmem:[%s1695_s3 + $0x80] sm:$0xff] %vm344_vm3, %v427_v61  ;;  %574 = vrot.lane.b32.xlu1 %v1043_v23, %s917_s16  ;;  %385 = vrot.lane.b32.xlu0 %v1109_v34, %s915_s14 }
 0x161   :  { %v429_v62 = vpop.permute.xlu1 %428  ;;  %v443_v63 = vpop.permute.xlu0 %442 }
 0x162   :  { %779 = vst.msk [vmem:[%s1695_s3 + $0x88] sm:$0xff] %vm344_vm3, %v429_v62  ;;  %786 = vst.msk [vmem:[%s1695_s3 + $0xc0] sm:$0xff] %vm344_vm3, %v443_v63 }
 0x163   :  { %578 = vrot.lane.b32.xlu1 %v1021_v19, %s917_s16  ;;  %499 = vrot.lane.b32.xlu0 %v1098_v32, %s916_s15 }
 0x165   :  { %v445_v0 = vpop.permute.xlu1 %444  ;;  %v496_v1 = vpop.permute.xlu0 %495 }
 0x166   :  { %787 = vst.msk [vmem:[%s1695_s3 + $0xc8] sm:$0xff] %vm344_vm3, %v445_v0 }
 0x167   :  { %796 = vst.msk [vmem:[%s1694_s2 + $0x88] sm:$0xf] %vm263_vm2, %v496_v1  ;;  %521 = vrot.lane.b32.xlu1 %v1130_v38, %s916_s15  ;;  %515 = vrot.lane.b32.xlu0 %v1109_v34, %s916_s15 }
 0x169   :  { %v498_v2 = vpop.permute.xlu1 %497  ;;  %v1399_v3 = vpop.permute.xlu0 %621 }
 0x16a   :  { %797 = vst.msk [vmem:[%s1694_s2 + $0x8c] sm:$0xf] %vm263_vm2, %v498_v2 }
 0x16b   :  { %566 = vrot.lane.b32.xlu1 %v1126_v37, %s917_s16  ;;  %560 = vrot.lane.b32.xlu0 %v981_v10, %s917_s16 }
 0x16d   :  { %v1409_v4 = vpop.permute.xlu1 %623  ;;  %v1411_v5 = vpop.permute.xlu0 %637 }
 0x16f   :  { %582 = vrot.lane.b32.xlu1 %v1137_v39, %s917_s16  ;;  %564 = vrot.lane.b32.xlu0 %v1083_v29, %s917_s16 }
 0x171   :  { %v1417_v6 = vpop.permute.xlu1 %639  ;;  %v512_v7 = vpop.permute.xlu0 %511 }
 0x172   :  { %804 = vst.msk [vmem:[%s1694_s2 + $0xa8] sm:$0xf] %vm263_vm2, %v512_v7 }
 0x173   :  { %371 = vrot.lane.b32.xlu1 %v1146_v40, %s915_s14  ;;  %568 = vrot.lane.b32.xlu0 %v1061_v26, %s917_s16 }
 0x175   :  { %v514_v8 = vpop.permute.xlu1 %513  ;;  %v557_v9 = vpop.permute.xlu0 %556 }
 0x176   :  { %805 = vst.msk [vmem:[%s1694_s2 + $0xac] sm:$0xf] %vm263_vm2, %v514_v8 }
 0x177   :  { %810 = vst.msk [vmem:[%s1695_s3 + $0x100] sm:$0xff] %vm344_vm3, %v557_v9  ;;  %387 = vrot.lane.b32.xlu1 %v1155_v41, %s915_s14  ;;  %572 = vrot.lane.b32.xlu0 %v999_v15, %s917_s16 }
 0x179   :  { %v364_v10 = vpop.permute.xlu1 %363  ;;  %v362_v12 = vpop.permute.xlu0 %361 }
 0x17a   :  { %763 = vst.msk [vmem:[%s1694_s2 + $0x44] sm:$0xf] %vm263_vm2, %v364_v10  ;;  %762 = vst.msk [vmem:[%s1694_s2 + $0x40] sm:$0xf] %vm263_vm2, %v362_v12 }
 0x17b   :  { %501 = vrot.lane.b32.xlu1 %v1146_v40, %s916_s15  ;;  %576 = vrot.lane.b32.xlu0 %v983_v11, %s917_s16 }
 0x17d   :  { %v380_v13 = vpop.permute.xlu1 %379  ;;  %v378_v14 = vpop.permute.xlu0 %377 }
 0x17e   :  { %771 = vst.msk [vmem:[%s1694_s2 + $0x64] sm:$0xf] %vm263_vm2, %v380_v13  ;;  %770 = vst.msk [vmem:[%s1694_s2 + $0x60] sm:$0xf] %vm263_vm2, %v378_v14 }
 0x17f   :  { %517 = vrot.lane.b32.xlu1 %v1155_v41, %s916_s15  ;;  %580 = vrot.lane.b32.xlu0 %v1089_v31, %s917_s16 }
 0x181   :  { %v494_v15 = vpop.permute.xlu1 %493  ;;  %v492_v11 = vpop.permute.xlu0 %491 }
 0x182   :  { %795 = vst.msk [vmem:[%s1694_s2 + $0x84] sm:$0xf] %vm263_vm2, %v494_v15  ;;  %794 = vst.msk [vmem:[%s1694_s2 + $0x80] sm:$0xf] %vm263_vm2, %v492_v11 }
 0x183   :  { %586 = vrot.lane.b32.xlu1 %v1113_v35, %s917_s16  ;;  %584 = vrot.lane.b32.xlu0 %v1070_v27, %s917_s16 }
 0x185   :  { %v510_v16 = vpop.permute.xlu1 %509  ;;  %v508_v17 = vpop.permute.xlu0 %507 }
 0x186   :  { %803 = vst.msk [vmem:[%s1694_s2 + $0xa4] sm:$0xf] %vm263_vm2, %v510_v16  ;;  %802 = vst.msk [vmem:[%s1694_s2 + $0xa0] sm:$0xf] %vm263_vm2, %v508_v17 }
 0x189   :  { %v311_v18 = vpop.permute.xlu1 %310  ;;  %v299_v19 = vpop.permute.xlu0 %298 }
 0x18a   :  { %352 = vst.msk [vmem:[%s1695_s3 + $0x38] sm:$0xff] %vm344_vm3, %v311_v18  ;;  %346 = vst.msk [vmem:[%s1695_s3 + $0x8] sm:$0xff] %vm344_vm3, %v299_v19 }
 0x18d   :  { %v327_v20 = vpop.permute.xlu1 %326  ;;  %v309_v21 = vpop.permute.xlu0 %308 }
 0x18e   :  { %360 = vst.msk [vmem:[%s1695_s3 + $0x78] sm:$0xff] %vm344_vm3, %v327_v20  ;;  %351 = vst.msk [vmem:[%s1695_s3 + $0x30] sm:$0xff] %vm344_vm3, %v309_v21 }
 0x191   :  { %v441_v22 = vpop.permute.xlu1 %440  ;;  %v325_v23 = vpop.permute.xlu0 %324 }
 0x192   :  { %785 = vst.msk [vmem:[%s1695_s3 + $0xb8] sm:$0xff] %vm344_vm3, %v441_v22  ;;  %359 = vst.msk [vmem:[%s1695_s3 + $0x70] sm:$0xff] %vm344_vm3, %v325_v23 }
 0x195   :  { %v457_v24 = vpop.permute.xlu1 %456  ;;  %v439_v25 = vpop.permute.xlu0 %438 }
 0x196   :  { %793 = vst.msk [vmem:[%s1695_s3 + $0xf8] sm:$0xff] %vm344_vm3, %v457_v24  ;;  %784 = vst.msk [vmem:[%s1695_s3 + $0xb0] sm:$0xff] %vm344_vm3, %v439_v25 }
 0x199   :  { %v636_v26 = vpop.permute.xlu1 %635  ;;  %v455_v27 = vpop.permute.xlu0 %454 }
 0x19a   :  { %792 = vst.msk [vmem:[%s1695_s3 + $0xf0] sm:$0xff] %vm344_vm3, %v455_v27 }
 0x19d   :  { %v1519_v28 = vpop.permute.xlu1 %651  ;;  %v634_v29 = vpop.permute.xlu0 %633 }
 0x1a1   :  { %v307_v30 = vpop.permute.xlu1 %306  ;;  %v1521_v31 = vpop.permute.xlu0 %649  ;;  %669 = vxpose.xlu0.b32.start [1/16] (narrow) %v1399_v3, 8 }
 0x1a2   :  { %350 = vst.msk [vmem:[%s1695_s3 + $0x28] sm:$0xff] %vm344_vm3, %v307_v30 }
 0x1a5   :  { %v323_v32 = vpop.permute.xlu1 %322  ;;  %v305_v33 = vpop.permute.xlu0 %304  ;;  %670 = vxpose.xlu0.b32.cont [2/16] (narrow) %v1409_v4, 8 }
 0x1a6   :  { %358 = vst.msk [vmem:[%s1695_s3 + $0x68] sm:$0xff] %vm344_vm3, %v323_v32  ;;  %349 = vst.msk [vmem:[%s1695_s3 + $0x20] sm:$0xff] %vm344_vm3, %v305_v33 }
 0x1a9   :  { %v376_v34 = vpop.permute.xlu1 %375  ;;  %v321_v35 = vpop.permute.xlu0 %320  ;;  %671 = vxpose.xlu0.b32.cont [3/16] (narrow) %v1299_v49, 8 }
 0x1aa   :  { %769 = vst.msk [vmem:[%s1694_s2 + $0x5c] sm:$0xf] %vm263_vm2, %v376_v34 }
 0x1ab   :  { %357 = vst.msk [vmem:[%s1695_s3 + $0x60] sm:$0xff] %vm344_vm3, %v321_v35 }
 0x1ad   :  { %v392_v36 = vpop.permute.xlu1 %391  ;;  %v374_v37 = vpop.permute.xlu0 %373  ;;  %672 = vxpose.xlu0.b32.cont [4/16] (narrow) %v1319_v52, 8 }
 0x1ae   :  { %777 = vst.msk [vmem:[%s1694_s2 + $0x7c] sm:$0xf] %vm263_vm2, %v392_v36  ;;  %768 = vst.msk [vmem:[%s1694_s2 + $0x58] sm:$0xf] %vm263_vm2, %v374_v37 }
 0x1b1   :  { %v437_v38 = vpop.permute.xlu1 %436  ;;  %v390_v39 = vpop.permute.xlu0 %389 }
 0x1b2   :  { %783 = vst.msk [vmem:[%s1695_s3 + $0xa8] sm:$0xff] %vm344_vm3, %v437_v38 }
 0x1b3   :  { %776 = vst.msk [vmem:[%s1694_s2 + $0x78] sm:$0xf] %vm263_vm2, %v390_v39 }
 0x1b5   :  { %v453_v40 = vpop.permute.xlu1 %452  ;;  %v435_v41 = vpop.permute.xlu0 %434 }
 0x1b6   :  { %791 = vst.msk [vmem:[%s1695_s3 + $0xe8] sm:$0xff] %vm344_vm3, %v453_v40  ;;  %782 = vst.msk [vmem:[%s1695_s3 + $0xa0] sm:$0xff] %vm344_vm3, %v435_v41 }
 0x1b9   :  { %v506_v42 = vpop.permute.xlu1 %505  ;;  %v451_v43 = vpop.permute.xlu0 %450 }
 0x1ba   :  { %801 = vst.msk [vmem:[%s1694_s2 + $0x9c] sm:$0xf] %vm263_vm2, %v506_v42 }
 0x1bb   :  { %790 = vst.msk [vmem:[%s1695_s3 + $0xe0] sm:$0xff] %vm344_vm3, %v451_v43 }
 0x1bd   :  { %v632_v44 = vpop.permute.xlu1 %631  ;;  %v504_v45 = vpop.permute.xlu0 %503 }
 0x1be   :  { %800 = vst.msk [vmem:[%s1694_s2 + $0x98] sm:$0xf] %vm263_vm2, %v504_v45 }
 0x1c1   :  { %v559_v46 = vpop.permute.xlu1 %558  ;;  %v630_v47 = vpop.permute.xlu0 %629 }
 0x1c2   :  { %811 = vst.msk [vmem:[%s1695_s3 + $0x108] sm:$0xff] %vm344_vm3, %v559_v46  ;;  %673 = vxpose.xlu0.b32.cont [5/16] (narrow) %v630_v47, 8 }
 0x1c5   :  { %v563_v48 = vpop.permute.xlu1 %562  ;;  %v646_v49 = vpop.permute.xlu0 %645 }
 0x1c6   :  { %813 = vst.msk [vmem:[%s1695_s3 + $0x118] sm:$0xff] %vm344_vm3, %v563_v48  ;;  %674 = vxpose.xlu0.b32.cont [6/16] (narrow) %v632_v44, 8 }
 0x1c9   :  { %v571_v50 = vpop.permute.xlu1 %570  ;;  %v520_v52 = vpop.permute.xlu0 %519 }
 0x1ca   :  { %817 = vst.msk [vmem:[%s1695_s3 + $0x138] sm:$0xff] %vm344_vm3, %v571_v50  ;;  %675 = vxpose.xlu0.b32.cont [7/16] (narrow) %v634_v29, 8 }
 0x1cb   :  { %808 = vst.msk [vmem:[%s1694_s2 + $0xb8] sm:$0xf] %vm263_vm2, %v520_v52 }
 0x1cd   :  { %v648_v53 = vpop.permute.xlu1 %647  ;;  %v370_v55 = vpop.permute.xlu0 %369 }
 0x1ce   :  { %766 = vst.msk [vmem:[%s1694_s2 + $0x50] sm:$0xf] %vm263_vm2, %v370_v55  ;;  %676 = vxpose.xlu0.b32.cont [8/16] (narrow) %v636_v26, 8 }
 0x1d1   :  { %v575_v56 = vpop.permute.xlu1 %574  ;;  %v386_v57 = vpop.permute.xlu0 %385 }
 0x1d2   :  { %819 = vst.msk [vmem:[%s1695_s3 + $0x148] sm:$0xff] %vm344_vm3, %v575_v56  ;;  %677 = vxpose.xlu0.b32.cont [9/16] (narrow) %v1411_v5, 8 }
 0x1d3   :  { %774 = vst.msk [vmem:[%s1694_s2 + $0x70] sm:$0xf] %vm263_vm2, %v386_v57 }
 0x1d5   :  { %v579_v58 = vpop.permute.xlu1 %578  ;;  %v500_v59 = vpop.permute.xlu0 %499 }
 0x1d6   :  { %821 = vst.msk [vmem:[%s1695_s3 + $0x158] sm:$0xff] %vm344_vm3, %v579_v58  ;;  %678 = vxpose.xlu0.b32.cont [10/16] (narrow) %v1417_v6, 8 }
 0x1d7   :  { %798 = vst.msk [vmem:[%s1694_s2 + $0x90] sm:$0xf] %vm263_vm2, %v500_v59 }
 0x1d9   :  { %v522_v60 = vpop.permute.xlu1 %521  ;;  %v516_v61 = vpop.permute.xlu0 %515 }
 0x1da   :  { %809 = vst.msk [vmem:[%s1694_s2 + $0xbc] sm:$0xf] %vm263_vm2, %v522_v60  ;;  %806 = vst.msk [vmem:[%s1694_s2 + $0xb0] sm:$0xf] %vm263_vm2, %v516_v61  ;;  %679 = vxpose.xlu0.b32.cont [11/16] (narrow) %v1309_v51, 8 }
 0x1dd   :  { %v567_v62 = vpop.permute.xlu1 %566  ;;  %v561_v63 = vpop.permute.xlu0 %560 }
 0x1de   :  { %815 = vst.msk [vmem:[%s1695_s3 + $0x128] sm:$0xff] %vm344_vm3, %v567_v62  ;;  %812 = vst.msk [vmem:[%s1695_s3 + $0x110] sm:$0xff] %vm344_vm3, %v561_v63  ;;  %680 = vxpose.xlu0.b32.cont [12/16] (narrow) %v1329_v54, 8 }
 0x1e1   :  { %v583_v0 = vpop.permute.xlu1 %582  ;;  %v565_v1 = vpop.permute.xlu0 %564 }
 0x1e2   :  { %823 = vst.msk [vmem:[%s1695_s3 + $0x168] sm:$0xff] %vm344_vm3, %v583_v0  ;;  %814 = vst.msk [vmem:[%s1695_s3 + $0x120] sm:$0xff] %vm344_vm3, %v565_v1  ;;  %681 = vxpose.xlu0.b32.cont [13/16] (narrow) %v646_v49, 8 }
 0x1e5   :  { %v372_v51 = vpop.permute.xlu1 %371  ;;  %v569_v2 = vpop.permute.xlu0 %568 }
 0x1e6   :  { %767 = vst.msk [vmem:[%s1694_s2 + $0x54] sm:$0xf] %vm263_vm2, %v372_v51  ;;  %682 = vxpose.xlu0.b32.cont [14/16] (narrow) %v648_v53, 8 }
 0x1e7   :  { %816 = vst.msk [vmem:[%s1695_s3 + $0x130] sm:$0xff] %vm344_vm3, %v569_v2 }
 0x1e9   :  { %v388_v54 = vpop.permute.xlu1 %387  ;;  %v573_v3 = vpop.permute.xlu0 %572 }
 0x1ea   :  { %775 = vst.msk [vmem:[%s1694_s2 + $0x74] sm:$0xf] %vm263_vm2, %v388_v54  ;;  %683 = vxpose.xlu0.b32.cont [15/16] (narrow) %v1521_v31, 8 }
 0x1eb   :  { %818 = vst.msk [vmem:[%s1695_s3 + $0x140] sm:$0xff] %vm344_vm3, %v573_v3 }
 0x1ed   :  { %v502_v4 = vpop.permute.xlu1 %501  ;;  %v577_v5 = vpop.permute.xlu0 %576 }
 0x1ee   :  { %799 = vst.msk [vmem:[%s1694_s2 + $0x94] sm:$0xf] %vm263_vm2, %v502_v4  ;;  %684 = vxpose.xlu0.b32.end [16/16] (narrow) %v1519_v28, 8 }
 0x1ef   :  { %820 = vst.msk [vmem:[%s1695_s3 + $0x150] sm:$0xff] %vm344_vm3, %v577_v5 }
 0x1f1   :  { %v518_v6 = vpop.permute.xlu1 %517  ;;  %v581_v7 = vpop.permute.xlu0 %580 }
 0x1f2   :  { %807 = vst.msk [vmem:[%s1694_s2 + $0xb4] sm:$0xf] %vm263_vm2, %v518_v6  ;;  %s890_s2 = scalar_lea.vmem %s716_s17, 48 }
 0x1f3   :  { %822 = vst.msk [vmem:[%s1695_s3 + $0x160] sm:$0xff] %vm344_vm3, %v581_v7  ;;  %p891_p0 = scmp.ne.s32.totalorder %s716_s17, %s890_s2  ;;  %p896_p2 = scmp.lt.s32.totalorder %s894_s18, %s890_s2 }
 0x1f5   :  { %v587_v8 = vpop.permute.xlu1 %586  ;;  %v585_v9 = vpop.permute.xlu0 %584  ;;  %p897_p3 = por %p896_p2, %p895_p1 }
 0x1f6   :  { %825 = vst.msk [vmem:[%s1695_s3 + $0x178] sm:$0xff] %vm344_vm3, %v587_v8  ;;  %824 = vst.msk [vmem:[%s1695_s3 + $0x170] sm:$0xff] %vm344_vm3, %v585_v9 }
 0x1f7   :  { %p898_p4 = pnand %p897_p3, %p891_p0 }
 0x22e   :  { %v685_v10 = vpop.trf.xlu0 }
 0x22f   :  { %701 = vst [vmem:[#allocation2] sm:$0x1] %v685_v10  ;;  %703 = vst [vmem:[#allocation2] sm:$0x2] %v685_v10 }
 0x230   :  { %705 = vst [vmem:[#allocation2] sm:$0x4] %v685_v10 }
 0x231   :  { %901 = shalt.err (!%p898_p4)
}
 0x232   :  { %s919_s19 = smov 16   ;;  %s920_s14 = smov 1  }
 0x233   :  { %721 = dma.vmem_to_hbm [thread:$0]  %s716_s17, 48, %s1696_s4, [#allocation3], %s919_s19, %s919_s19, %s920_s14  }
 0x234   :  { %910 = dma.done.wait [#allocation3], 48  }
 0x235   :  { %911 = vsyncadd [#allocation3], 4294967248 }
 0x236   :  { %729 = vsyncpa [#allocation3], 1 }

</bundles_post_ra>
